<compile_context>
chip_gen: v7x
topology: tpu7x:2x2x1
jax: 0.10.0
libtpu: 0.0.40
codegen_flags: <defaults>
</compile_context>

<pallas_src>
import functools

import jax
import jax.numpy as jnp
import numpy as np
from jax import lax
from jax.experimental import pallas as pl
from jax.experimental.pallas import tpu as pltpu


def _mlm_stats_kernel(logits_ref, tm_ref, out_ref, *, num_fold_rows,
                      nb_per_split, vocab, fold):
    c = pl.program_id(0)          # split (TensorCore shard) index
    i = pl.program_id(1)          # row-block index within the split

    # The output block index only depends on c, so the (1,1,4) block stays
    # resident in VMEM across the whole split: use it directly as accumulator.
    @pl.when(i == 0)
    def _():
        out_ref[...] = jnp.zeros_like(out_ref)

    x = logits_ref[...].astype(jnp.float32)      # (TR, fold*V), dense f32 cast
    tm = tm_ref[...]                             # (TR, fold) packed int32
    tgt_seg = tm & ((1 << 30) - 1)               # target token id per segment
    msk_seg = tm >> 30                           # mask_aa per segment (0/1)

    TR = x.shape[0]
    V = vocab

    # Folded-row validity for the ragged tail / clamped duplicate blocks.
    # Inputs are NOT padded in HBM, so rows >= num_fold_rows may hold garbage
    # -> always select with where (never multiply) so NaN/Inf cannot leak.
    r_iota = lax.broadcasted_iota(jnp.int32, (TR, 1), 0)
    row_valid = (c * nb_per_split + i) * TR + r_iota < num_fold_rows   # (TR,1)

    vocab_iota = lax.broadcasted_iota(jnp.int32, (1, V), 1)

    # Exact per-segment maxes, broadcast back to a lane-dense (TR, fold*V)
    # array so the expensive exp runs at full 128-lane density.
    m_parts = [jnp.max(x[:, s * V:(s + 1) * V], axis=-1, keepdims=True)
               for s in range(fold)]                                   # fold x (TR,1)
    if fold > 1:
        m_lane = jnp.concatenate(
            [jnp.broadcast_to(m, (TR, V)) for m in m_parts], axis=-1)  # (TR, fold*V)
    else:
        m_lane = jnp.broadcast_to(m_parts[0], (TR, V))
    e = jnp.exp(x - m_lane)                                            # dense EUP

    nll_p, cnt_p, corr_p, msk_p = [], [], [], []
    for s in range(fold):                       # static unroll (fold <= 4 typ.)
        xs = x[:, s * V:(s + 1) * V]            # (TR, V)
        es = e[:, s * V:(s + 1) * V]
        m_s = m_parts[s]                        # (TR, 1)
        tgt_s = tgt_seg[:, s:s + 1]             # (TR, 1) int32
        msk_s = msk_seg[:, s:s + 1]

        lse_s = m_s + jnp.log(jnp.sum(es, axis=-1, keepdims=True))     # (TR,1)
        onehot = vocab_iota == tgt_s                                   # (TR,V)
        tl_s = jnp.sum(jnp.where(onehot, xs, 0.0), axis=-1, keepdims=True)
        # First-maximal-index argmax (same tie-break as torch.argmax).
        am_s = jnp.min(jnp.where(xs == m_s, vocab_iota, V),
                       axis=-1, keepdims=True)

        mvalid = row_valid & (msk_s != 0)       # masked-token rows
        lvalid = mvalid & (tgt_s != 0)          # CrossEntropy ignore_index=0

        nll_p.append(jnp.where(lvalid, lse_s - tl_s, 0.0))
        cnt_p.append(lvalid.astype(jnp.float32))
        corr_p.append((mvalid & (am_s == tgt_s)).astype(jnp.float32))
        msk_p.append(mvalid.astype(jnp.float32))

    def _tot(parts):                 # fold x (TR,1) columns -> (1,1) step sum
        t = parts[0]
        for p in parts[1:]:
            t = t + p
        return jnp.sum(t, axis=0, keepdims=True)

    step = jnp.concatenate(
        [_tot(nll_p), _tot(cnt_p), _tot(corr_p), _tot(msk_p)], axis=-1)  # (1,4)
    out_ref[...] += step.reshape(1, 1, 4)


# Tile budget (double-buffered inputs + dense f32 temporaries) and the scoped
# VMEM limit.  48 MiB stays under v7x's 64 MiB physical VMEM and comfortably
# under v5e/v6e's 128 MiB while being well above their default scoped limits.
_VMEM_TILE_BUDGET_BYTES = 24 * 1024 * 1024
_VMEM_LIMIT_BYTES = 48 * 1024 * 1024


def _pick_block_rows(num_fold_rows, width, itemsize):
    lane = 128
    w_pad = pl.cdiv(width, lane) * lane
    per_row = (2 * w_pad * itemsize      # double-buffered logits tile
               + 2 * lane * 4            # double-buffered packed tgt|mask tile
               + 3 * w_pad * 4)          # dense in-kernel f32 temporaries
    desired = _VMEM_TILE_BUDGET_BYTES // max(per_row, 1)
    desired = max(64, (desired // 32) * 32)
    # A full-height block is always a legal block shape regardless of (8,128)
    # divisibility; otherwise keep a multiple of 32 rows.
    return num_fold_rows if num_fold_rows <= desired else desired


def _num_tensorcores():
    """2 TensorCores per chip on TPU7x / megacore parts; 1 on v5e / v6e."""
    try:
        kind = jax.devices()[0].device_kind.lower()
    except Exception:
        return 1
    return 2 if any(t in kind for t in ("v7", "7x", "v4", "v5p")) else 1


@functools.partial(jax.jit, static_argnames=("atom_loss_coeff",))
def protein_mae3d_criterions(x, logits, mask_aa, *, atom_loss_coeff=1.0):
    """x: [B, L] int tokens; logits: [B, L, V] (any float dtype); mask_aa: [B, L, 1]."""
    B, L, V = logits.shape
    R = B * L

    # Lane folding: pack `fold` consecutive rows into the 128-lane dimension so
    # small vocabularies (V ~= 32) use every lane of every vreg and every byte
    # of every DMA'd VMEM row.  Only fold when it keeps the reshape free and
    # exact (128 % V == 0 and fold divides R); otherwise fall back to fold=1.
    if V <= 64 and 128 % V == 0:
        fold = 128 // V                      # power of two
        while R % fold:
            fold //= 2
    else:
        fold = 1
    Rf, W = R // fold, fold * V

    logits_f = logits.reshape(Rf, W)         # free contiguous reshape, native dtype
    tm = (x.reshape(R).astype(jnp.int32)
          | (mask_aa.reshape(R).astype(jnp.int32) << 30)).reshape(Rf, fold)

    block_rows = _pick_block_rows(Rf, W, jnp.dtype(logits.dtype).itemsize)
    nb = pl.cdiv(Rf, block_rows)                       # number of row blocks
    num_splits = 2 if (_num_tensorcores() == 2 and nb >= 2) else 1
    nb_per_split = pl.cdiv(nb, num_splits)

    def row_block(c, i):
        # Clamp so the extra block of an uneven split never maps out of bounds;
        # its rows are masked out in-kernel via the logical row index.
        return jnp.minimum(c * nb_per_split + i, nb - 1)

    kernel = functools.partial(_mlm_stats_kernel, num_fold_rows=Rf,
                               nb_per_split=nb_per_split, vocab=V, fold=fold)

    partial_stats = pl.pallas_call(
        kernel,
        out_shape=jax.ShapeDtypeStruct((num_splits, 1, 4), jnp.float32),
        grid_spec=pltpu.PrefetchScalarGridSpec(
            num_scalar_prefetch=0,
            grid=(num_splits, nb_per_split),
            in_specs=[
                pl.BlockSpec((block_rows, W), lambda c, i: (row_block(c, i), 0)),
                pl.BlockSpec((block_rows, fold),
                             lambda c, i: (row_block(c, i), 0)),
            ],
            out_specs=pl.BlockSpec((1, 1, 4), lambda c, i: (c, 0, 0)),
        ),
        compiler_params=pltpu.CompilerParams(
            dimension_semantics=("parallel", "arbitrary"),
            vmem_limit_bytes=_VMEM_LIMIT_BYTES),
    )(logits_f, tm)

    stats = jnp.sum(partial_stats, axis=(0, 1))        # (4,)
    loss_sum, loss_cnt, acc_cnt, msk_cnt = stats[0], stats[1], stats[2], stats[3]

    # Mirrors the `if mask_aa.any()` branch of the PyTorch module: with no
    # masked tokens both loss and accuracy are 0.  (When masked tokens exist
    # but all have target == 0, torch's mean-CE would return NaN; we return 0.)
    has_mask = msk_cnt > 0
    type_loss = jnp.where(
        has_mask, loss_sum / jnp.maximum(loss_cnt, 1.0) * atom_loss_coeff, 0.0)
    type_acc = jnp.where(has_mask, acc_cnt / jnp.maximum(msk_cnt, 1.0), 0.0)

    # TODO(synk): the reference module constructs an MSELoss but always returns
    # pos_loss == 0 (never computes it), so there is nothing to kernelize here.
    pos_loss = jnp.float32(0.0)
    loss = type_loss + pos_loss
    return loss, {"total_loss": loss, "loss_type": type_loss,
                  "loss_pos": pos_loss, "type_acc": type_acc}


def protein_mlm_ref(x, logits, mask_aa, atom_loss_coeff):
    """Pure-JAX reference mirroring the PyTorch module (for correctness check)."""
    B, L, V = logits.shape
    m = mask_aa.reshape(B, L).astype(bool)
    tgt = x.astype(jnp.int32)
    logits32 = logits.astype(jnp.float32)
    logp = jax.nn.log_softmax(logits32, axis=-1)
    nll = -jnp.take_along_axis(logp, tgt[..., None], axis=-1)[..., 0]
    valid = m & (tgt != 0)
    type_loss = jnp.sum(jnp.where(valid, nll, 0.0)) / jnp.sum(valid) * atom_loss_coeff
    correct = (jnp.argmax(logits32, axis=-1) == tgt) & m
    type_acc = jnp.sum(correct).astype(jnp.float32) / jnp.sum(m)
    return type_loss, type_acc


if __name__ == "__main__":
    # Deterministic "args": num_residues (vocab size) and atom_loss_coeff.
    NUM_RESIDUES = 32          # args.num_residues
    ATOM_LOSS_COEFF = 1.5      # args.atom_loss_coeff
    B, L, V = 2, 8, NUM_RESIDUES

    key = jax.random.PRNGKey(0)
    k1, k2, k3 = jax.random.split(key, 3)

    x = jax.random.randint(k1, (B, L), 0, V, dtype=jnp.int32)          # batch_data['x']
    # Model logits in their native bf16 — passed straight through to the kernel.
    logits = jax.random.normal(k2, (B, L, V), dtype=jnp.float32).astype(jnp.bfloat16)
    mask_aa = jax.random.uniform(k3, (B, L, 1)) < 0.5                  # [B, L, 1] bool
    # Guarantee at least one masked, non-ignored token (deterministic).
    mask_aa = mask_aa.at[0, 0, 0].set(True)
    x = x.at[0, 0].set(5)

    loss, logs = protein_mae3d_criterions(x, logits, mask_aa,
                                          atom_loss_coeff=ATOM_LOSS_COEFF)
    loss = jax.block_until_ready(loss)
    logs = jax.block_until_ready(logs)

    ref_loss, ref_acc = protein_mlm_ref(x, logits, mask_aa, ATOM_LOSS_COEFF)
    assert np.allclose(np.asarray(loss), np.asarray(ref_loss),
                       rtol=1e-3, atol=1e-3), (float(loss), float(ref_loss))
    assert np.allclose(np.asarray(logs["type_acc"]), np.asarray(ref_acc),
                       rtol=1e-3, atol=1e-3), (float(logs["type_acc"]), float(ref_acc))

    print("KERNEL_OK")
</pallas_src>

<mosaic_0001>
module attributes {stable_mosaic.version = 11 : i64} {
  func.func @_mlm_stats_kernel(%arg0: i32, %arg1: i32, %arg2: memref<4x128xbf16, #tpu.memory_space<vmem>>, %arg3: memref<4x4xi32, #tpu.memory_space<vmem>>, %arg4: memref<1x1x4xf32, #tpu.memory_space<vmem>>) attributes {dimension_semantics = [#tpu.dimension_semantics<parallel>, #tpu.dimension_semantics<arbitrary>], iteration_bounds = array<i64: 1, 1>, scalar_prefetch = 0 : i64, scratch_operands = 0 : i64, tpu.core_type = #tpu.core_type<tc>, window_params = [{transform_indices = @transform_0, window_bounds = array<i64: 4, 128>}, {transform_indices = @transform_1, window_bounds = array<i64: 4, 4>}, {transform_indices = @transform_2, window_bounds = array<i64: 1, 1, 4>}]} {
    %c0_i32 = arith.constant 0 : i32
    %0 = arith.cmpi eq, %arg1, %c0_i32 : i32
    %1 = arith.extui %0 : i1 to i32
    %c0_i32_0 = arith.constant 0 : i32
    %2 = arith.cmpi ne, %1, %c0_i32_0 : i32
    scf.if %2 {
      %cst_49 = arith.constant 0.000000e+00 : f32
      %227 = vector.broadcast %cst_49 : f32 to vector<1x1x4xf32>
      %c0_50 = arith.constant 0 : index
      %c0_51 = arith.constant 0 : index
      %c0_52 = arith.constant 0 : index
      %228 = vector.load %arg4[%c0_50, %c0_51, %c0_52] : memref<1x1x4xf32, #tpu.memory_space<vmem>>, vector<1x1x4xf32>
      tpu.vector_store %arg4[%c0_50, %c0_51, %c0_52], %227 {strides = array<i32>} : memref<1x1x4xf32, #tpu.memory_space<vmem>>, vector<1x1x4xf32>,
    } else {
    }
    %c0 = arith.constant 0 : index
    %c0_1 = arith.constant 0 : index
    %3 = vector.load %arg2[%c0, %c0_1] : memref<4x128xbf16, #tpu.memory_space<vmem>>, vector<4x128xbf16>
    %4 = arith.extf %3 : vector<4x128xbf16> to vector<4x128xf32>
    %c0_2 = arith.constant 0 : index
    %c0_3 = arith.constant 0 : index
    %5 = vector.load %arg3[%c0_2, %c0_3] : memref<4x4xi32, #tpu.memory_space<vmem>>, vector<4x4xi32>
    %c1073741823_i32 = arith.constant 1073741823 : i32
    %6 = vector.broadcast %c1073741823_i32 : i32 to vector<4x4xi32>
    %7 = arith.andi %5, %6 : vector<4x4xi32>
    %c30_i32 = arith.constant 30 : i32
    %8 = vector.broadcast %c30_i32 : i32 to vector<4x4xi32>
    %9 = arith.shrsi %5, %8 : vector<4x4xi32>
    %10 = tpu.iota {dimensions = array<i32: 0>} : vector<4x1xi32>
    %c1_i32 = arith.constant 1 : i32
    %11 = arith.muli %arg0, %c1_i32 : i32
    %12 = arith.addi %11, %arg1 : i32
    %c4_i32 = arith.constant 4 : i32
    %13 = arith.muli %12, %c4_i32 : i32
    %14 = vector.broadcast %13 : i32 to vector<4x1xi32>
    %15 = arith.addi %14, %10 : vector<4x1xi32>
    %c4_i32_4 = arith.constant 4 : i32
    %16 = vector.broadcast %c4_i32_4 : i32 to vector<4x1xi32>
    %17 = arith.cmpi slt, %15, %16 : vector<4x1xi32>
    %18 = tpu.iota {dimensions = array<i32: 1>} : vector<1x32xi32>
    %19 = vector.extract_strided_slice %4 {offsets = [0, 0], sizes = [4, 32], strides = [1, 1]} : vector<4x128xf32> to vector<4x32xf32>
    %cst = arith.constant dense<0xFF800000> : vector<4xf32>
    %20 = vector.multi_reduction <maximumf>, %19, %cst [1] : vector<4x32xf32> to vector<4xf32>
    %21 = vector.shape_cast %20 : vector<4xf32> to vector<4x1xf32>
    %22 = vector.extract_strided_slice %4 {offsets = [0, 32], sizes = [4, 32], strides = [1, 1]} : vector<4x128xf32> to vector<4x32xf32>
    %cst_5 = arith.constant dense<0xFF800000> : vector<4xf32>
    %23 = vector.multi_reduction <maximumf>, %22, %cst_5 [1] : vector<4x32xf32> to vector<4xf32>
    %24 = vector.shape_cast %23 : vector<4xf32> to vector<4x1xf32>
    %25 = vector.extract_strided_slice %4 {offsets = [0, 64], sizes = [4, 32], strides = [1, 1]} : vector<4x128xf32> to vector<4x32xf32>
    %cst_6 = arith.constant dense<0xFF800000> : vector<4xf32>
    %26 = vector.multi_reduction <maximumf>, %25, %cst_6 [1] : vector<4x32xf32> to vector<4xf32>
    %27 = vector.shape_cast %26 : vector<4xf32> to vector<4x1xf32>
    %28 = vector.extract_strided_slice %4 {offsets = [0, 96], sizes = [4, 32], strides = [1, 1]} : vector<4x128xf32> to vector<4x32xf32>
    %cst_7 = arith.constant dense<0xFF800000> : vector<4xf32>
    %29 = vector.multi_reduction <maximumf>, %28, %cst_7 [1] : vector<4x32xf32> to vector<4xf32>
    %30 = vector.shape_cast %29 : vector<4xf32> to vector<4x1xf32>
    %31 = vector.shape_cast %21 : vector<4x1xf32> to vector<4x1xf32>
    %32 = vector.broadcast %31 : vector<4x1xf32> to vector<4x32xf32>
    %33 = vector.shape_cast %24 : vector<4x1xf32> to vector<4x1xf32>
    %34 = vector.broadcast %33 : vector<4x1xf32> to vector<4x32xf32>
    %35 = vector.shape_cast %27 : vector<4x1xf32> to vector<4x1xf32>
    %36 = vector.broadcast %35 : vector<4x1xf32> to vector<4x32xf32>
    %37 = vector.shape_cast %30 : vector<4x1xf32> to vector<4x1xf32>
    %38 = vector.broadcast %37 : vector<4x1xf32> to vector<4x32xf32>
    %39 = tpu.concatenate %32, %34, %36, %38 in 1 : vector<4x32xf32>, vector<4x32xf32>, vector<4x32xf32>, vector<4x32xf32> -> vector<4x128xf32>
    %40 = arith.subf %4, %39 : vector<4x128xf32>
    %41 = math.exp %40 : vector<4x128xf32>
    %42 = vector.extract_strided_slice %4 {offsets = [0, 0], sizes = [4, 32], strides = [1, 1]} : vector<4x128xf32> to vector<4x32xf32>
    %43 = vector.extract_strided_slice %41 {offsets = [0, 0], sizes = [4, 32], strides = [1, 1]} : vector<4x128xf32> to vector<4x32xf32>
    %44 = vector.extract_strided_slice %7 {offsets = [0, 0], sizes = [4, 1], strides = [1, 1]} : vector<4x4xi32> to vector<4x1xi32>
    %45 = vector.extract_strided_slice %9 {offsets = [0, 0], sizes = [4, 1], strides = [1, 1]} : vector<4x4xi32> to vector<4x1xi32>
    %cst_8 = arith.constant dense<0.000000e+00> : vector<4xf32>
    %46 = vector.multi_reduction <add>, %43, %cst_8 [1] : vector<4x32xf32> to vector<4xf32>
    %47 = vector.shape_cast %46 : vector<4xf32> to vector<4x1xf32>
    %48 = math.log %47 : vector<4x1xf32>
    %49 = arith.addf %21, %48 : vector<4x1xf32>
    %50 = vector.broadcast %18 : vector<1x32xi32> to vector<4x32xi32>
    %51 = vector.broadcast %44 : vector<4x1xi32> to vector<4x32xi32>
    %52 = arith.cmpi eq, %50, %51 : vector<4x32xi32>
    %cst_9 = arith.constant 0.000000e+00 : f32
    %53 = vector.broadcast %cst_9 : f32 to vector<4x32xf32>
    %54 = arith.select %52, %42, %53 : vector<4x32xi1>, vector<4x32xf32>
    %cst_10 = arith.constant dense<0.000000e+00> : vector<4xf32>
    %55 = vector.multi_reduction <add>, %54, %cst_10 [1] : vector<4x32xf32> to vector<4xf32>
    %56 = vector.shape_cast %55 : vector<4xf32> to vector<4x1xf32>
    %57 = vector.broadcast %21 : vector<4x1xf32> to vector<4x32xf32>
    %58 = arith.cmpf oeq, %42, %57 : vector<4x32xf32>
    %c32_i32 = arith.constant 32 : i32
    %59 = vector.shape_cast %18 : vector<1x32xi32> to vector<1x32xi32>
    %60 = vector.broadcast %59 : vector<1x32xi32> to vector<4x32xi32>
    %61 = vector.broadcast %c32_i32 : i32 to vector<4x32xi32>
    %62 = arith.select %58, %60, %61 : vector<4x32xi1>, vector<4x32xi32>
    %cst_11 = arith.constant dense<2147483647> : vector<4xi32>
    %63 = vector.multi_reduction <minsi>, %62, %cst_11 [1] : vector<4x32xi32> to vector<4xi32>
    %64 = vector.shape_cast %63 : vector<4xi32> to vector<4x1xi32>
    %c0_i32_12 = arith.constant 0 : i32
    %65 = vector.broadcast %c0_i32_12 : i32 to vector<4x1xi32>
    %66 = arith.cmpi ne, %45, %65 : vector<4x1xi32>
    %67 = arith.andi %17, %66 : vector<4x1xi1>
    %c0_i32_13 = arith.constant 0 : i32
    %68 = vector.broadcast %c0_i32_13 : i32 to vector<4x1xi32>
    %69 = arith.cmpi ne, %44, %68 : vector<4x1xi32>
    %70 = arith.andi %67, %69 : vector<4x1xi1>
    %71 = arith.subf %49, %56 : vector<4x1xf32>
    %cst_14 = arith.constant 0.000000e+00 : f32
    %72 = vector.broadcast %cst_14 : f32 to vector<4x1xf32>
    %73 = arith.select %70, %71, %72 : vector<4x1xi1>, vector<4x1xf32>
    %74 = arith.extui %70 : vector<4x1xi1> to vector<4x1xi32>
    %75 = arith.sitofp %74 : vector<4x1xi32> to vector<4x1xf32>
    %76 = arith.cmpi eq, %64, %44 : vector<4x1xi32>
    %77 = arith.andi %67, %76 : vector<4x1xi1>
    %78 = arith.extui %77 : vector<4x1xi1> to vector<4x1xi32>
    %79 = arith.sitofp %78 : vector<4x1xi32> to vector<4x1xf32>
    %80 = arith.extui %67 : vector<4x1xi1> to vector<4x1xi32>
    %81 = arith.sitofp %80 : vector<4x1xi32> to vector<4x1xf32>
    %82 = vector.extract_strided_slice %4 {offsets = [0, 32], sizes = [4, 32], strides = [1, 1]} : vector<4x128xf32> to vector<4x32xf32>
    %83 = vector.extract_strided_slice %41 {offsets = [0, 32], sizes = [4, 32], strides = [1, 1]} : vector<4x128xf32> to vector<4x32xf32>
    %84 = vector.extract_strided_slice %7 {offsets = [0, 1], sizes = [4, 1], strides = [1, 1]} : vector<4x4xi32> to vector<4x1xi32>
    %85 = vector.extract_strided_slice %9 {offsets = [0, 1], sizes = [4, 1], strides = [1, 1]} : vector<4x4xi32> to vector<4x1xi32>
    %cst_15 = arith.constant dense<0.000000e+00> : vector<4xf32>
    %86 = vector.multi_reduction <add>, %83, %cst_15 [1] : vector<4x32xf32> to vector<4xf32>
    %87 = vector.shape_cast %86 : vector<4xf32> to vector<4x1xf32>
    %88 = math.log %87 : vector<4x1xf32>
    %89 = arith.addf %24, %88 : vector<4x1xf32>
    %90 = vector.broadcast %18 : vector<1x32xi32> to vector<4x32xi32>
    %91 = vector.broadcast %84 : vector<4x1xi32> to vector<4x32xi32>
    %92 = arith.cmpi eq, %90, %91 : vector<4x32xi32>
    %cst_16 = arith.constant 0.000000e+00 : f32
    %93 = vector.broadcast %cst_16 : f32 to vector<4x32xf32>
    %94 = arith.select %92, %82, %93 : vector<4x32xi1>, vector<4x32xf32>
    %cst_17 = arith.constant dense<0.000000e+00> : vector<4xf32>
    %95 = vector.multi_reduction <add>, %94, %cst_17 [1] : vector<4x32xf32> to vector<4xf32>
    %96 = vector.shape_cast %95 : vector<4xf32> to vector<4x1xf32>
    %97 = vector.broadcast %24 : vector<4x1xf32> to vector<4x32xf32>
    %98 = arith.cmpf oeq, %82, %97 : vector<4x32xf32>
    %c32_i32_18 = arith.constant 32 : i32
    %99 = vector.shape_cast %18 : vector<1x32xi32> to vector<1x32xi32>
    %100 = vector.broadcast %99 : vector<1x32xi32> to vector<4x32xi32>
    %101 = vector.broadcast %c32_i32_18 : i32 to vector<4x32xi32>
    %102 = arith.select %98, %100, %101 : vector<4x32xi1>, vector<4x32xi32>
    %cst_19 = arith.constant dense<2147483647> : vector<4xi32>
    %103 = vector.multi_reduction <minsi>, %102, %cst_19 [1] : vector<4x32xi32> to vector<4xi32>
    %104 = vector.shape_cast %103 : vector<4xi32> to vector<4x1xi32>
    %c0_i32_20 = arith.constant 0 : i32
    %105 = vector.broadcast %c0_i32_20 : i32 to vector<4x1xi32>
    %106 = arith.cmpi ne, %85, %105 : vector<4x1xi32>
    %107 = arith.andi %17, %106 : vector<4x1xi1>
    %c0_i32_21 = arith.constant 0 : i32
    %108 = vector.broadcast %c0_i32_21 : i32 to vector<4x1xi32>
    %109 = arith.cmpi ne, %84, %108 : vector<4x1xi32>
    %110 = arith.andi %107, %109 : vector<4x1xi1>
    %111 = arith.subf %89, %96 : vector<4x1xf32>
    %cst_22 = arith.constant 0.000000e+00 : f32
    %112 = vector.broadcast %cst_22 : f32 to vector<4x1xf32>
    %113 = arith.select %110, %111, %112 : vector<4x1xi1>, vector<4x1xf32>
    %114 = arith.extui %110 : vector<4x1xi1> to vector<4x1xi32>
    %115 = arith.sitofp %114 : vector<4x1xi32> to vector<4x1xf32>
    %116 = arith.cmpi eq, %104, %84 : vector<4x1xi32>
    %117 = arith.andi %107, %116 : vector<4x1xi1>
    %118 = arith.extui %117 : vector<4x1xi1> to vector<4x1xi32>
    %119 = arith.sitofp %118 : vector<4x1xi32> to vector<4x1xf32>
    %120 = arith.extui %107 : vector<4x1xi1> to vector<4x1xi32>
    %121 = arith.sitofp %120 : vector<4x1xi32> to vector<4x1xf32>
    %122 = vector.extract_strided_slice %4 {offsets = [0, 64], sizes = [4, 32], strides = [1, 1]} : vector<4x128xf32> to vector<4x32xf32>
    %123 = vector.extract_strided_slice %41 {offsets = [0, 64], sizes = [4, 32], strides = [1, 1]} : vector<4x128xf32> to vector<4x32xf32>
    %124 = vector.extract_strided_slice %7 {offsets = [0, 2], sizes = [4, 1], strides = [1, 1]} : vector<4x4xi32> to vector<4x1xi32>
    %125 = vector.extract_strided_slice %9 {offsets = [0, 2], sizes = [4, 1], strides = [1, 1]} : vector<4x4xi32> to vector<4x1xi32>
    %cst_23 = arith.constant dense<0.000000e+00> : vector<4xf32>
    %126 = vector.multi_reduction <add>, %123, %cst_23 [1] : vector<4x32xf32> to vector<4xf32>
    %127 = vector.shape_cast %126 : vector<4xf32> to vector<4x1xf32>
    %128 = math.log %127 : vector<4x1xf32>
    %129 = arith.addf %27, %128 : vector<4x1xf32>
    %130 = vector.broadcast %18 : vector<1x32xi32> to vector<4x32xi32>
    %131 = vector.broadcast %124 : vector<4x1xi32> to vector<4x32xi32>
    %132 = arith.cmpi eq, %130, %131 : vector<4x32xi32>
    %cst_24 = arith.constant 0.000000e+00 : f32
    %133 = vector.broadcast %cst_24 : f32 to vector<4x32xf32>
    %134 = arith.select %132, %122, %133 : vector<4x32xi1>, vector<4x32xf32>
    %cst_25 = arith.constant dense<0.000000e+00> : vector<4xf32>
    %135 = vector.multi_reduction <add>, %134, %cst_25 [1] : vector<4x32xf32> to vector<4xf32>
    %136 = vector.shape_cast %135 : vector<4xf32> to vector<4x1xf32>
    %137 = vector.broadcast %27 : vector<4x1xf32> to vector<4x32xf32>
    %138 = arith.cmpf oeq, %122, %137 : vector<4x32xf32>
    %c32_i32_26 = arith.constant 32 : i32
    %139 = vector.shape_cast %18 : vector<1x32xi32> to vector<1x32xi32>
    %140 = vector.broadcast %139 : vector<1x32xi32> to vector<4x32xi32>
    %141 = vector.broadcast %c32_i32_26 : i32 to vector<4x32xi32>
    %142 = arith.select %138, %140, %141 : vector<4x32xi1>, vector<4x32xi32>
    %cst_27 = arith.constant dense<2147483647> : vector<4xi32>
    %143 = vector.multi_reduction <minsi>, %142, %cst_27 [1] : vector<4x32xi32> to vector<4xi32>
    %144 = vector.shape_cast %143 : vector<4xi32> to vector<4x1xi32>
    %c0_i32_28 = arith.constant 0 : i32
    %145 = vector.broadcast %c0_i32_28 : i32 to vector<4x1xi32>
    %146 = arith.cmpi ne, %125, %145 : vector<4x1xi32>
    %147 = arith.andi %17, %146 : vector<4x1xi1>
    %c0_i32_29 = arith.constant 0 : i32
    %148 = vector.broadcast %c0_i32_29 : i32 to vector<4x1xi32>
    %149 = arith.cmpi ne, %124, %148 : vector<4x1xi32>
    %150 = arith.andi %147, %149 : vector<4x1xi1>
    %151 = arith.subf %129, %136 : vector<4x1xf32>
    %cst_30 = arith.constant 0.000000e+00 : f32
    %152 = vector.broadcast %cst_30 : f32 to vector<4x1xf32>
    %153 = arith.select %150, %151, %152 : vector<4x1xi1>, vector<4x1xf32>
    %154 = arith.extui %150 : vector<4x1xi1> to vector<4x1xi32>
    %155 = arith.sitofp %154 : vector<4x1xi32> to vector<4x1xf32>
    %156 = arith.cmpi eq, %144, %124 : vector<4x1xi32>
    %157 = arith.andi %147, %156 : vector<4x1xi1>
    %158 = arith.extui %157 : vector<4x1xi1> to vector<4x1xi32>
    %159 = arith.sitofp %158 : vector<4x1xi32> to vector<4x1xf32>
    %160 = arith.extui %147 : vector<4x1xi1> to vector<4x1xi32>
    %161 = arith.sitofp %160 : vector<4x1xi32> to vector<4x1xf32>
    %162 = vector.extract_strided_slice %4 {offsets = [0, 96], sizes = [4, 32], strides = [1, 1]} : vector<4x128xf32> to vector<4x32xf32>
    %163 = vector.extract_strided_slice %41 {offsets = [0, 96], sizes = [4, 32], strides = [1, 1]} : vector<4x128xf32> to vector<4x32xf32>
    %164 = vector.extract_strided_slice %7 {offsets = [0, 3], sizes = [4, 1], strides = [1, 1]} : vector<4x4xi32> to vector<4x1xi32>
    %165 = vector.extract_strided_slice %9 {offsets = [0, 3], sizes = [4, 1], strides = [1, 1]} : vector<4x4xi32> to vector<4x1xi32>
    %cst_31 = arith.constant dense<0.000000e+00> : vector<4xf32>
    %166 = vector.multi_reduction <add>, %163, %cst_31 [1] : vector<4x32xf32> to vector<4xf32>
    %167 = vector.shape_cast %166 : vector<4xf32> to vector<4x1xf32>
    %168 = math.log %167 : vector<4x1xf32>
    %169 = arith.addf %30, %168 : vector<4x1xf32>
    %170 = vector.broadcast %18 : vector<1x32xi32> to vector<4x32xi32>
    %171 = vector.broadcast %164 : vector<4x1xi32> to vector<4x32xi32>
    %172 = arith.cmpi eq, %170, %171 : vector<4x32xi32>
    %cst_32 = arith.constant 0.000000e+00 : f32
    %173 = vector.broadcast %cst_32 : f32 to vector<4x32xf32>
    %174 = arith.select %172, %162, %173 : vector<4x32xi1>, vector<4x32xf32>
    %cst_33 = arith.constant dense<0.000000e+00> : vector<4xf32>
    %175 = vector.multi_reduction <add>, %174, %cst_33 [1] : vector<4x32xf32> to vector<4xf32>
    %176 = vector.shape_cast %175 : vector<4xf32> to vector<4x1xf32>
    %177 = vector.broadcast %30 : vector<4x1xf32> to vector<4x32xf32>
    %178 = arith.cmpf oeq, %162, %177 : vector<4x32xf32>
    %c32_i32_34 = arith.constant 32 : i32
    %179 = vector.shape_cast %18 : vector<1x32xi32> to vector<1x32xi32>
    %180 = vector.broadcast %179 : vector<1x32xi32> to vector<4x32xi32>
    %181 = vector.broadcast %c32_i32_34 : i32 to vector<4x32xi32>
    %182 = arith.select %178, %180, %181 : vector<4x32xi1>, vector<4x32xi32>
    %cst_35 = arith.constant dense<2147483647> : vector<4xi32>
    %183 = vector.multi_reduction <minsi>, %182, %cst_35 [1] : vector<4x32xi32> to vector<4xi32>
    %184 = vector.shape_cast %183 : vector<4xi32> to vector<4x1xi32>
    %c0_i32_36 = arith.constant 0 : i32
    %185 = vector.broadcast %c0_i32_36 : i32 to vector<4x1xi32>
    %186 = arith.cmpi ne, %165, %185 : vector<4x1xi32>
    %187 = arith.andi %17, %186 : vector<4x1xi1>
    %c0_i32_37 = arith.constant 0 : i32
    %188 = vector.broadcast %c0_i32_37 : i32 to vector<4x1xi32>
    %189 = arith.cmpi ne, %164, %188 : vector<4x1xi32>
    %190 = arith.andi %187, %189 : vector<4x1xi1>
    %191 = arith.subf %169, %176 : vector<4x1xf32>
    %cst_38 = arith.constant 0.000000e+00 : f32
    %192 = vector.broadcast %cst_38 : f32 to vector<4x1xf32>
    %193 = arith.select %190, %191, %192 : vector<4x1xi1>, vector<4x1xf32>
    %194 = arith.extui %190 : vector<4x1xi1> to vector<4x1xi32>
    %195 = arith.sitofp %194 : vector<4x1xi32> to vector<4x1xf32>
    %196 = arith.cmpi eq, %184, %164 : vector<4x1xi32>
    %197 = arith.andi %187, %196 : vector<4x1xi1>
    %198 = arith.extui %197 : vector<4x1xi1> to vector<4x1xi32>
    %199 = arith.sitofp %198 : vector<4x1xi32> to vector<4x1xf32>
    %200 = arith.extui %187 : vector<4x1xi1> to vector<4x1xi32>
    %201 = arith.sitofp %200 : vector<4x1xi32> to vector<4x1xf32>
    %202 = arith.addf %73, %113 : vector<4x1xf32>
    %203 = arith.addf %202, %153 : vector<4x1xf32>
    %204 = arith.addf %203, %193 : vector<4x1xf32>
    %cst_39 = arith.constant dense<0.000000e+00> : vector<1xf32>
    %205 = vector.multi_reduction <add>, %204, %cst_39 [0] : vector<4x1xf32> to vector<1xf32>
    %206 = vector.shape_cast %205 : vector<1xf32> to vector<1x1xf32>
    %207 = arith.addf %75, %115 : vector<4x1xf32>
    %208 = arith.addf %207, %155 : vector<4x1xf32>
    %209 = arith.addf %208, %195 : vector<4x1xf32>
    %cst_40 = arith.constant dense<0.000000e+00> : vector<1xf32>
    %210 = vector.multi_reduction <add>, %209, %cst_40 [0] : vector<4x1xf32> to vector<1xf32>
    %211 = vector.shape_cast %210 : vector<1xf32> to vector<1x1xf32>
    %212 = arith.addf %79, %119 : vector<4x1xf32>
    %213 = arith.addf %212, %159 : vector<4x1xf32>
    %214 = arith.addf %213, %199 : vector<4x1xf32>
    %cst_41 = arith.constant dense<0.000000e+00> : vector<1xf32>
    %215 = vector.multi_reduction <add>, %214, %cst_41 [0] : vector<4x1xf32> to vector<1xf32>
    %216 = vector.shape_cast %215 : vector<1xf32> to vector<1x1xf32>
    %217 = arith.addf %81, %121 : vector<4x1xf32>
    %218 = arith.addf %217, %161 : vector<4x1xf32>
    %219 = arith.addf %218, %201 : vector<4x1xf32>
    %cst_42 = arith.constant dense<0.000000e+00> : vector<1xf32>
    %220 = vector.multi_reduction <add>, %219, %cst_42 [0] : vector<4x1xf32> to vector<1xf32>
    %221 = vector.shape_cast %220 : vector<1xf32> to vector<1x1xf32>
    %222 = tpu.concatenate %206, %211, %216, %221 in 1 : vector<1x1xf32>, vector<1x1xf32>, vector<1x1xf32>, vector<1x1xf32> -> vector<1x4xf32>
    %c0_43 = arith.constant 0 : index
    %c0_44 = arith.constant 0 : index
    %c0_45 = arith.constant 0 : index
    %223 = vector.load %arg4[%c0_43, %c0_44, %c0_45] : memref<1x1x4xf32, #tpu.memory_space<vmem>>, vector<1x1x4xf32>
    %224 = vector.shape_cast %222 : vector<1x4xf32> to vector<1x1x4xf32>
    %225 = arith.addf %223, %224 : vector<1x1x4xf32>
    %c0_46 = arith.constant 0 : index
    %c0_47 = arith.constant 0 : index
    %c0_48 = arith.constant 0 : index
    %226 = vector.load %arg4[%c0_46, %c0_47, %c0_48] : memref<1x1x4xf32, #tpu.memory_space<vmem>>, vector<1x1x4xf32>
    tpu.vector_store %arg4[%c0_46, %c0_47, %c0_48], %225 {strides = array<i32>} : memref<1x1x4xf32, #tpu.memory_space<vmem>>, vector<1x1x4xf32>,
    return
  }
  func.func @transform_0(%arg0: i32, %arg1: i32) -> (i32, i32) {
    %c1_i32 = arith.constant 1 : i32
    %0 = arith.muli %arg0, %c1_i32 : i32
    %1 = arith.addi %0, %arg1 : i32
    %c0_i32 = arith.constant 0 : i32
    %2 = arith.minsi %1, %c0_i32 : i32
    %c0_i32_0 = arith.constant 0 : i32
    %c0_i32_1 = arith.constant 0 : i32
    return %2, %c0_i32_0 : i32, i32
  }
  func.func @transform_1(%arg0: i32, %arg1: i32) -> (i32, i32) {
    %c1_i32 = arith.constant 1 : i32
    %0 = arith.muli %arg0, %c1_i32 : i32
    %1 = arith.addi %0, %arg1 : i32
    %c0_i32 = arith.constant 0 : i32
    %2 = arith.minsi %1, %c0_i32 : i32
    %c0_i32_0 = arith.constant 0 : i32
    %c0_i32_1 = arith.constant 0 : i32
    return %2, %c0_i32_0 : i32, i32
  }
  func.func @transform_2(%arg0: i32, %arg1: i32) -> (i32, i32, i32) {
    %c0_i32 = arith.constant 0 : i32
    %c0_i32_0 = arith.constant 0 : i32
    %c0_i32_1 = arith.constant 0 : i32
    return %arg0, %c0_i32, %c0_i32_0 : i32, i32, i32
  }
}

</mosaic_0001>

<bundles_post_ra>
// kernel: protein_mae3d_criterions.1
= control target key start
LH: loop header
LB: loop body
LE: loop exit
PB: predicated region body
PF: predicated region fallthrough
CT: control target
= control target key end

     0   :  { %vm93_vm0 = vcmask 781824   ;;  %vm85_vm1 = vcmask 257024   ;;  %v471_v2 = vmov 0   ;;  %vm97_vm2 = vcmask 1044224   ;;  %s473_s12 = smov 64   ;;  %s475_s13 = smov 32   ;;  %s688_s0 = inlined_call_operand.vmem [shape: bf16[4,128], index: 0, kind: input, shape index: {}]   ;;  %s689_s1 = inlined_call_operand.vmem [shape: s32[4,4], index: 1, kind: input, shape index: {}]   ;;  %s690_s2 = inlined_call_operand.vmem [shape: f32[1,1,4], index: 2, kind: output, shape index: {}]  }
   0x1   :  { %v71_v0 = vld [vmem:[%s688_s0] sm:$0x3]  ;;  %435 = vset.pattern.permute.xlu1 %v471_v2  ;;  %vm89_vm3 = vcmask 519424   ;;  %v472_v3 = vmov 2   ;;  %v76_v10 = vlaneseq  ;;  %v474_v12 = vmov 1   ;;  %s479_s14 = smov 127  }
   0x2   :  { %v503_v1 = vunpack.c.l.bf16 %v71_v0  ;;  %437 = vset.pattern.permute.xlu0 %v472_v3  ;;  %v516_v8 = vld [vmem:[%s689_s1] sm:$0xf]  ;;  %s476_s1 = smov 96   ;;  %v477_v13 = vmov 3   ;;  %vm101_vm8 = vcmask 261120   ;;  %vm103_vm10 = vcmask 523264  }
   0x3   :  { %v519_v9 = vand.u32 1073741823, %v516_v8  ;;  %v523_v11 = vand.u32 127, %v76_v10  ;;  %vm105_vm11 = vcmask 785408   ;;  %s480_s15 = smov 126   ;;  %s481_s16 = smov 125  }
   0x4   :  { %v94_v4 = vsel %vm93_vm0, %v503_v1, -inf  ;;  %v86_v5 = vsel %vm85_vm1, %v503_v1, -inf  ;;  %v98_v6 = vsel %vm97_vm2, %v503_v1, -inf  ;;  %v90_v7 = vsel %vm89_vm3, %v503_v1, -inf  ;;  %s482_s19 = smov 2   ;;  %s483_s20 = smov 1  }
   0x5   :  { %95 = vmax.xlane.f32.xlu1 %v94_v4  ;;  %87 = vmax.xlane.f32.xlu0 %v86_v5  ;;  %s484_s21 = smov 3  }
   0x9   :  { %99 = vmax.xlane.f32.xlu1 %v98_v6  ;;  %91 = vmax.xlane.f32.xlu0 %v90_v7 }
  0x1a   :  { %117 = vperm.xlu1 %435, %v519_v9  }
  0x1e   :  { %223 = vrot.lane.b32.xlu1 %v523_v11, %s473_s12 }
  0x1f   :  { %436 = vset.pattern.permute.xlu1 %v474_v12  ;;  %178 = vrot.lane.b32.xlu0 %v523_v11, %s475_s13 }
  0x22   :  { %268 = vrot.lane.b32.xlu1 %v523_v11, %s476_s1 }
  0x23   :  { %170 = vrot.lane.b32.xlu0 %v503_v1, %s476_s1 }
  0x26   :  { %166 = vperm.xlu1 %436, %v519_v9  }
  0x27   :  { %212 = vperm.xlu0 %437, %v519_v9  }
  0x2a   :  { %438 = vset.pattern.permute.xlu1 %v477_v13 }
  0x2b   :  { %257 = vperm.xlu1 %438, %v519_v9   ;;  %454 = vset.pattern.permute.xlu0 %v477_v13 }
  0x92   :  { %v536_v14 = vpop.xlane.xlu1 %95  ;;  %v538_v15 = vpop.xlane.xlu0 %87 }
  0x93   :  { %vm124_vm4 = vcmp.eq.f32.partialorder %v503_v1, %v538_v15  ;;  %vm222_vm6 = vcmp.eq.f32.partialorder %v503_v1, %v536_v14 }
  0x94   :  { %v125_v16 = vsel %vm124_vm4, %v523_v11, 32 }
  0x95   :  { %v126_v17 = vsel %vm85_vm1, %v125_v16, 2147483647 }
  0x96   :  { %v544_v18 = vpop.xlane.xlu1 %99  ;;  %v128_v19 = vshra.s32 %v126_v17, 16  ;;  %v546_v22 = vpop.xlane.xlu0 %91  ;;  %v127_v52 = vand.u32 65535, %v126_v17 }
  0x97   :  { %vm177_vm7 = vcmp.eq.f32.partialorder %v503_v1, %v546_v22  ;;  %vm267_vm9 = vcmp.eq.f32.partialorder %v503_v1, %v544_v18  ;;  %v102_v32 = vsel %vm101_vm8, %v538_v15, %v546_v22 }
  0x98   :  { %v130_v20 = vcvt.s32.f32 %v128_v19  ;;  %v104_v39 = vsel %vm103_vm10, %v102_v32, %v536_v14  ;;  %v129_v54 = vcvt.s32.f32 %v127_v52 }
  0x99   :  { %v106_v44 = vsel %vm105_vm11, %v104_v39, %v544_v18 }
  0x9a   :  { %v118_v21 = vpop.permute.xlu1 %117  ;;  %131 = vmin.xlane.f32.xlu0 %v130_v20  ;;  %v179_v27 = vpop.permute.xlu0 %178  ;;  %v107_v46 = vsub.f32 %v503_v1, %v106_v44 }
  0x9b   :  { %vm119_vm5 = vcmp.eq.s32.totalorder %v523_v11, %v118_v21  ;;  %v180_v31 = vsel %vm177_vm7, %v179_v27, 32  ;;  %v75_v21 = vshra.s32 %v516_v8, 30 }
  0x9c   :  { %v120_v23 = vsel %vm119_vm5, %v503_v1, 0.0  ;;  %v181_v36 = vsel %vm89_vm3, %v180_v31, 2147483647  ;;  %v108_v48 = vmul.f32 1.442695, %v107_v46  ;;  %vm143_vm5 = vcmp.ne.s32.totalorder %v519_v9, 0 }
  0x9d   :  { %v121_v24 = vsel %vm85_vm1, %v120_v23, 0.0  ;;  %v183_v43 = vshra.s32 %v181_v36, 16  ;;  %v182_v0 = vand.u32 65535, %v181_v36  ;;  %v77_v23 = vshrl.u32 %v76_v10, 7 }
  0x9e   :  { %122 = vadd.xlane.f32.xlu1 %v121_v24  ;;  %v224_v25 = vpop.permute.xlu1 %223  ;;  %v171_v37 = vpop.permute.xlu0 %170  ;;  %455 = vpow2.f32 %v108_v48  ;;  %vm141_vm3 = vcmp.ne.s32.totalorder %v75_v21, 0 }
  0x9f   :  { %v225_v26 = vsel %vm222_vm6, %v224_v25, 32  ;;  %v185_v47 = vcvt.s32.f32 %v183_v43  ;;  %v184_v6 = vcvt.s32.f32 %v182_v0  ;;  %v478_v25 = vmov 0.0  }
  0xa0   :  { %v226_v28 = vsel %vm93_vm0, %v225_v26, 2147483647 }
  0xa1   :  { %v228_v29 = vshra.s32 %v226_v28, 16  ;;  %v227_v56 = vand.u32 65535, %v226_v28 }
  0xa2   :  { %v269_v30 = vpop.permute.xlu1 %268 }
  0xa3   :  { %v270_v33 = vsel %vm267_vm9, %v269_v30, 32  ;;  %v230_v34 = vcvt.s32.f32 %v228_v29  ;;  %v229_v59 = vcvt.s32.f32 %v227_v56 }
  0xa4   :  { %v271_v35 = vsel %vm97_vm2, %v270_v33, 2147483647  ;;  %vm82_vm2 = vcmp.lt.s32.totalorder %v77_v23, 4 }
  0xa5   :  { %231 = vmin.xlane.f32.xlu0 %v230_v34  ;;  %v273_v38 = vshra.s32 %v271_v35, 16  ;;  %v272_v5 = vand.u32 65535, %v271_v35  ;;  %vm591_vm4 = vmand %vm82_vm2, %vm141_vm3  ;;  %vm307_vm2 = vcmask 3072   ;;  %vm389_vm3 = vcmask 7168  }
  0xa6   :  { %v167_v40 = vpop.permute.xlu1 %166  ;;  %v571_v51 = vpop.permute.xlu0 %212  ;;  %vm611_vm7 = vmand %vm591_vm4, %vm143_vm5  ;;  %vm393_vm5 = vcmask 23552  }
  0xa7   :  { %vm168_vm12 = vcmp.eq.s32.totalorder %v523_v11, %v167_v40  ;;  %v275_v41 = vcvt.s32.f32 %v273_v38  ;;  %v274_v12 = vcvt.s32.f32 %v272_v5  ;;  %vm214_vm6 = vcmp.eq.s32.totalorder %v523_v11, %v571_v51 }
  0xa8   :  { %v173_v42 = vsel %vm168_vm12, %v171_v37, 0.0  ;;  %v456_v49 = vpop.eup %455  ;;  %v619_v38 = vsel %vm611_vm7, 1.0, %v478_v25 }
  0xa9   :  { %276 = vmin.xlane.f32.xlu0 %v275_v41  ;;  %v174_v45 = vsel %vm85_vm1, %v173_v42, 0.0  ;;  %v110_v50 = vsel %vm85_vm1, %v456_v49, 0.0 }
  0xaa   :  { %175 = vadd.xlane.f32.xlu1 %v174_v45  ;;  %v573_v57 = vpop.permute.xlu1 %257 }
  0xab   :  { %vm259_vm10 = vcmp.eq.s32.totalorder %v523_v11, %v573_v57 }
  0xae   :  { %186 = vmin.xlane.f32.xlu1 %v185_v47 }
  0xbf   :  { %156 = vrot.lane.b32.xlu0 %v456_v49, %s476_s1  ;;  %202 = vrot.lane.b32.xlu1 %v456_v49, %s473_s12 }
  0xc3   :  { %247 = vrot.lane.b32.xlu1 %v456_v49, %s475_s13 }
  0xde   :  { %111 = vadd.xlane.f32.xlu0 %v110_v50 }
 0x127   :  { %v132_v53 = vpop.xlane.xlu0 %131 }
 0x128   :  { %vm133_vm13 = vcmp.eq.f32.partialorder %v130_v20, %v132_v53  ;;  %v138_v8 = vcvt.f32.s32 %v132_v53 }
 0x129   :  { %v134_v55 = vsel %vm133_vm13, %v129_v54, inf }
 0x12a   :  { %135 = vmin.xlane.f32.xlu0 %v134_v55  ;;  %v139_v27 = vshll.u32 %v138_v8, 16 }
 0x12b   :  { %v575_v60 = vpop.xlane.xlu1 %122 }
 0x132   :  { %v232_v58 = vpop.xlane.xlu0 %231 }
 0x133   :  { %vm233_vm14 = vcmp.eq.f32.partialorder %v230_v34, %v232_v58  ;;  %v238_v30 = vcvt.f32.s32 %v232_v58 }
 0x134   :  { %v234_v61 = vsel %vm233_vm14, %v229_v59, inf }
 0x135   :  { %235 = vmin.xlane.f32.xlu0 %v234_v61  ;;  %v239_v32 = vshll.u32 %v238_v30, 16 }
 0x136   :  { %v277_v62 = vpop.xlane.xlu0 %276 }
 0x137   :  { %v577_v63 = vpop.xlane.xlu1 %175  ;;  %vm278_vm0 = vcmp.eq.f32.partialorder %v275_v41, %v277_v62  ;;  %v283_v44 = vcvt.f32.s32 %v277_v62 }
 0x138   :  { %v279_v13 = vsel %vm278_vm0, %v274_v12, inf  ;;  %vm69_vm0 = vcmask 24576  }
 0x139   :  { %v284_v46 = vshll.u32 %v283_v44, 16  ;;  %70 = vst.msk [vmem:[%s690_s2] sm:$0x1] %vm69_vm0, %v478_v25 }
 0x13a   :  { %v157_v2 = vpop.permute.xlu0 %156 }
 0x13b   :  { %v579_v3 = vpop.xlane.xlu1 %186  ;;  %v159_v4 = vsel %vm85_vm1, %v157_v2, 0.0 }
 0x13c   :  { %160 = vadd.xlane.f32.xlu1 %v159_v4  ;;  %vm188_vm15 = vcmp.eq.f32.partialorder %v185_v47, %v579_v3  ;;  %v193_v53 = vcvt.f32.s32 %v579_v3 }
 0x13d   :  { %v189_v7 = vsel %vm188_vm15, %v184_v6, inf }
 0x13e   :  { %v194_v11 = vshll.u32 %v193_v53, 16 }
 0x13f   :  { %v203_v16 = vpop.permute.xlu1 %202 }
 0x140   :  { %190 = vmin.xlane.f32.xlu1 %v189_v7  ;;  %v205_v17 = vsel %vm85_vm1, %v203_v16, 0.0  ;;  %v395_v36 = vld [vmem:[%s690_s2] sm:$0x1] }
 0x143   :  { %v248_v19 = vpop.permute.xlu1 %247 }
 0x144   :  { %280 = vmin.xlane.f32.xlu1 %v279_v13  ;;  %v250_v20 = vsel %vm85_vm1, %v248_v19, 0.0 }
 0x14b   :  { %215 = vrot.lane.b32.xlu0 %v503_v1, %s473_s12 }
 0x155   :  { %260 = vrot.lane.b32.xlu1 %v503_v1, %s475_s13  ;;  %v598_v1 = vsel %vm591_vm4, 1.0, %v478_v25 }
 0x16a   :  { %206 = vadd.xlane.f32.xlu0 %v205_v17 }
 0x16b   :  { %v602_v26 = vpop.xlane.xlu0 %111 }
 0x179   :  { %251 = vadd.xlane.f32.xlu1 %v250_v20 }
 0x18a   :  { %358 = vrot.lane.b32.xlu1 %v598_v1, %s479_s14 }
 0x1b7   :  { %v136_v10 = vpop.xlane.xlu0 %135 }
 0x1b8   :  { %v137_v28 = vcvt.f32.s32 %v136_v10 }
 0x1ba   :  { %v604_v29 = vadd.s32 %v139_v27, %v137_v28 }
 0x1bc   :  { %vm149_vm14 = vcmp.eq.s32.totalorder %v604_v29, %v519_v9 }
 0x1bd   :  { %vm150_vm15 = vmand %vm591_vm4, %vm149_vm14 }
 0x1c2   :  { %v236_v31 = vpop.xlane.xlu0 %235 }
 0x1c3   :  { %v237_v33 = vcvt.f32.s32 %v236_v31 }
 0x1c5   :  { %v240_v34 = vadd.s32 %v239_v32, %v237_v33 }
 0x1c6   :  { %v216_v35 = vpop.permute.xlu0 %215 }
 0x1c7   :  { %vm243_vm8 = vcmp.eq.s32.totalorder %v240_v34, %v519_v9  ;;  %v218_v37 = vsel %vm214_vm6, %v216_v35, 0.0 }
 0x1c8   :  { %vm244_vm9 = vmand %vm591_vm4, %vm243_vm8  ;;  %v219_v39 = vsel %vm85_vm1, %v218_v37, 0.0 }
 0x1c9   :  { %v161_v40 = vpop.xlane.xlu1 %160  ;;  %220 = vadd.xlane.f32.xlu0 %v219_v39  ;;  %v419_v41 = vsel %vm244_vm9, 1.0, %v478_v25 }
 0x1ca   :  { %v444_v42 = vpack.i.bf16 %v419_v41, %v619_v38  ;;  %457 = vlog2.f32 %v161_v40 }
 0x1cc   :  { %445 = vrot.lane.b32.xlu1 %v444_v42, %s480_s15 }
 0x1cd   :  { %v191_v43 = vpop.xlane.xlu1 %190 }
 0x1ce   :  { %v192_v55 = vcvt.f32.s32 %v191_v43 }
 0x1d0   :  { %v195_v56 = vadd.s32 %v194_v11, %v192_v55 }
 0x1d1   :  { %v281_v45 = vpop.xlane.xlu1 %280 }
 0x1d2   :  { %v282_v47 = vcvt.f32.s32 %v281_v45  ;;  %vm198_vm13 = vcmp.eq.s32.totalorder %v195_v56, %v519_v9 }
 0x1d4   :  { %v285_v48 = vadd.s32 %v284_v46, %v282_v47  ;;  %v458_v57 = vpop.eup %457 }
 0x1d5   :  { %v261_v49 = vpop.permute.xlu1 %260  ;;  %v163_v58 = vmul.f32 0.6931472, %v458_v57 }
 0x1d6   :  { %vm288_vm11 = vcmp.eq.s32.totalorder %v285_v48, %v519_v9  ;;  %v263_v50 = vsel %vm259_vm10, %v261_v49, 0.0 }
 0x1d7   :  { %vm289_vm12 = vmand %vm591_vm4, %vm288_vm11  ;;  %v264_v51 = vsel %vm85_vm1, %v263_v50, 0.0  ;;  %v164_v62 = vadd.f32 %v163_v58, %v546_v22 }
 0x1d8   :  { %265 = vadd.xlane.f32.xlu0 %v264_v51  ;;  %v420_v52 = vsel %vm289_vm12, 1.0, %v478_v25  ;;  %vm199_vm1 = vmand %vm591_vm4, %vm198_vm13  ;;  %vm391_vm4 = vcmask 15360  }
 0x1d9   :  { %v449_v54 = vpack.i.bf16 %v420_v52, %v619_v38  ;;  %v418_v59 = vsel %vm199_vm1, 1.0, %v478_v25  ;;  %v196_v0 = vsub.f32 %v164_v62, %v577_v63 }
 0x1da   :  { %v439_v61 = vpack.i.bf16 %v418_v59, %v619_v38 }
 0x1db   :  { %450 = vrot.lane.b32.xlu1 %v449_v54, %s481_s16  ;;  %v197_v2 = vsel %vm611_vm7, %v196_v0, 0.0 }
 0x1df   :  { %366 = vrot.lane.b32.xlu1 %v598_v1, %s481_s16 }
 0x1ee   :  { %440 = vrot.lane.b32.xlu0 %v439_v61, %s479_s14 }
 0x1f2   :  { %362 = vrot.lane.b32.xlu0 %v598_v1, %s480_s15 }
 0x1f6   :  { %293 = vrot.lane.b32.xlu0 %v197_v2, %s479_s14 }
 0x1f7   :  { %v207_v3 = vpop.xlane.xlu0 %206 }
 0x1f8   :  { %459 = vlog2.f32 %v207_v3 }
 0x202   :  { %v460_v4 = vpop.eup %459 }
 0x203   :  { %v209_v6 = vmul.f32 0.6931472, %v460_v4 }
 0x205   :  { %v210_v22 = vadd.f32 %v209_v6, %v536_v14 }
 0x206   :  { %v252_v5 = vpop.xlane.xlu1 %251 }
 0x207   :  { %461 = vlog2.f32 %v252_v5 }
 0x208   :  { %463 = vlog2.f32 %v602_v26 }
 0x20a   :  { %v359_v16 = vpop.permute.xlu1 %358 }
 0x20b   :  { %v361_v27 = vadd.f32 %v598_v1, %v359_v16 }
 0x211   :  { %v462_v13 = vpop.eup %461 }
 0x212   :  { %v254_v17 = vmul.f32 0.6931472, %v462_v13  ;;  %v464_v11 = vpop.eup %463 }
 0x213   :  { %v114_v56 = vmul.f32 0.6931472, %v464_v11 }
 0x214   :  { %v255_v19 = vadd.f32 %v254_v17, %v544_v18  ;;  %v416_v18 = vsel %vm150_vm15, 1.0, %v478_v25 }
 0x215   :  { %v115_v57 = vadd.f32 %v114_v56, %v538_v15 }
 0x217   :  { %v145_v58 = vsub.f32 %v115_v57, %v575_v60 }
 0x219   :  { %v146_v61 = vsel %vm611_vm7, %v145_v58, 0.0 }
 0x23e   :  { %v446_v20 = vpop.permute.xlu1 %445 }
 0x24d   :  { %v451_v8 = vpop.permute.xlu1 %450 }
 0x251   :  { %v367_v30 = vpop.permute.xlu1 %366 }
 0x256   :  { %v221_v7 = vpop.xlane.xlu0 %220 }
 0x257   :  { %v241_v12 = vsub.f32 %v210_v22, %v221_v7 }
 0x259   :  { %v242_v63 = vsel %vm611_vm7, %v241_v12, 0.0 }
 0x25a   :  { %298 = vrot.lane.b32.xlu1 %v242_v63, %s480_s15 }
 0x265   :  { %v266_v21 = vpop.xlane.xlu0 %265 }
 0x266   :  { %v286_v23 = vsub.f32 %v255_v19, %v266_v21 }
 0x268   :  { %v287_v14 = vsel %vm611_vm7, %v286_v23, 0.0 }
 0x269   :  { %303 = vrot.lane.b32.xlu0 %v287_v14, %s481_s16  ;;  %v441_v10 = vpop.permute.xlu0 %440 }
 0x26a   :  { %v465_v28 = vadd.high.f32.bf16 %v416_v18, %v441_v10  ;;  %v466_v9 = vadd.low.f32.bf16 %v619_v38, %v441_v10 }
 0x26c   :  { %v467_v31 = vadd.high.f32.bf16 %v465_v28, %v446_v20  ;;  %v468_v32 = vadd.low.f32.bf16 %v466_v9, %v446_v20 }
 0x26d   :  { %v363_v29 = vpop.permute.xlu0 %362 }
 0x26e   :  { %v365_v24 = vadd.f32 %v363_v29, %v361_v27  ;;  %v469_v33 = vadd.high.f32.bf16 %v467_v31, %v451_v8  ;;  %v470_v1 = vadd.low.f32.bf16 %v468_v32, %v451_v8 }
 0x270   :  { %v369_v34 = vadd.f32 %v367_v30, %v365_v24  ;;  %v350_v37 = vsel %vm307_vm2, %v469_v33, 0.0  ;;  %v328_v38 = vsel %vm307_vm2, %v470_v1, 0.0 }
 0x271   :  { %v351_v40 = vrot.slane %v350_v37, 4  ;;  %v329_v41 = vrot.slane %v328_v38, 4  ;;  %v294_v59 = vpop.permute.xlu0 %293 }
 0x272   :  { %v370_v35 = vsel %vm307_vm2, %v369_v34, 0.0  ;;  %v296_v0 = vadd.f32 %v294_v59, %v146_v61 }
 0x273   :  { %v371_v39 = vrot.slane %v370_v35, 4  ;;  %v352_v43 = vadd.f32 %v351_v40, %v350_v37  ;;  %v330_v44 = vadd.f32 %v329_v41, %v328_v38 }
 0x275   :  { %v372_v42 = vadd.f32 %v371_v39, %v370_v35  ;;  %v353_v46 = vrot.slane %v352_v43, 2  ;;  %v331_v47 = vrot.slane %v330_v44, 2 }
 0x277   :  { %v373_v45 = vrot.slane %v372_v42, 2  ;;  %v354_v25 = vadd.f32 %v353_v46, %v352_v43  ;;  %v332_v49 = vadd.f32 %v331_v47, %v330_v44 }
 0x279   :  { %v374_v48 = vadd.f32 %v373_v45, %v372_v42  ;;  %v355_v50 = vrot.slane %v354_v25, 1  ;;  %v333_v51 = vrot.slane %v332_v49, 1 }
 0x27b   :  { %v356_v52 = vadd.f32 %v355_v50, %v354_v25  ;;  %v334_v53 = vadd.f32 %v333_v51, %v332_v49  ;;  %v375_v54 = vrot.slane %v374_v48, 1 }
 0x27d   :  { %382 = vrot.lane.b32.xlu0 %v356_v52, %s482_s19  ;;  %378 = vrot.lane.b32.xlu1 %v334_v53, %s483_s20  ;;  %v376_v55 = vadd.f32 %v375_v54, %v374_v48 }
 0x281   :  { %386 = vrot.lane.b32.xlu1 %v376_v55, %s484_s21 }
 0x2cc   :  { %v299_v62 = vpop.permute.xlu1 %298 }
 0x2cd   :  { %v301_v2 = vadd.f32 %v299_v62, %v296_v0 }
 0x2db   :  { %v304_v3 = vpop.permute.xlu0 %303 }
 0x2dc   :  { %v306_v4 = vadd.f32 %v304_v3, %v301_v2 }
 0x2de   :  { %v308_v5 = vsel %vm307_vm2, %v306_v4, 0.0 }
 0x2df   :  { %v309_v6 = vrot.slane %v308_v5, 4 }
 0x2e1   :  { %v310_v22 = vadd.f32 %v309_v6, %v308_v5 }
 0x2e3   :  { %v311_v26 = vrot.slane %v310_v22, 2 }
 0x2e5   :  { %v312_v7 = vadd.f32 %v311_v26, %v310_v22 }
 0x2e7   :  { %v313_v12 = vrot.slane %v312_v7, 1 }
 0x2e9   :  { %v314_v15 = vadd.f32 %v313_v12, %v312_v7 }
 0x2ef   :  { %v379_v63 = vpop.permute.xlu1 %378  ;;  %v383_v60 = vpop.permute.xlu0 %382 }
 0x2f0   :  { %v390_v13 = vsel %vm389_vm3, %v314_v15, %v379_v63 }
 0x2f1   :  { %v392_v16 = vsel %vm391_vm4, %v390_v13, %v383_v60 }
 0x2f3   :  { %v387_v17 = vpop.permute.xlu1 %386 }
 0x2f4   :  { %v394_v19 = vsel %vm393_vm5, %v392_v16, %v387_v17 }
 0x2f5   :  { %v396_v20 = vadd.f32 %v395_v36, %v394_v19 }
 0x2f7   :  { %398 = vst.msk [vmem:[%s690_s2] sm:$0x1] %vm69_vm0, %v396_v20 }

</bundles_post_ra>
